<compile_context>
chip_gen: v5e
topology: v5e:2x2
jax: 0.10.0
libtpu: 0.0.40
codegen_flags: <defaults>
</compile_context>

<pallas_src>
import math
import functools

import jax
import jax.numpy as jnp
from jax.experimental import pallas as pl
from jax.experimental.pallas import tpu as pltpu


def _resampler_kernel(cond_ref, w_ref, b_ref, out_ref, *, num_latents):
    """Single invocation, all operands VMEM-resident (tiny shapes).

    rows[b, :]        = cond[b, :] @ W_total + b_total          (one MXU dot)
    out[b, l*D : (l+1)*D] = rows[b, :]   for every latent l     (lane tile)
    """
    rows = jnp.dot(cond_ref[...], w_ref[...],
                   preferred_element_type=jnp.float32) + b_ref[...]      # [B, D]
    # Lane-axis replication -> flat [B, L*D] output, dense unmasked stores.
    out_ref[...] = jnp.tile(rows, (1, num_latents)).astype(out_ref.dtype)


def fold_params(raw_params, n_heads):
    """ONE-TIME parameter prep (call at init, not per forward call).

    raw_params = (proj_w [D,C], proj_b [D], in_w [3D,D], in_b [3D],
                  out_w [D,D], out_b [D])  -- exact nn.Module parameter shapes.
    n_heads is accepted for API parity; with a length-1 kv axis the output is
    independent of the head split.
    """
    del n_heads
    proj_w, proj_b, in_w, in_b, out_w, out_b = raw_params
    D = out_w.shape[0]
    assert in_w.shape == (3 * D, D) and in_b.shape == (3 * D,)
    # Valid only because the module's kv sequence length is exactly 1.
    wv = in_w[2 * D:3 * D]                                     # value in_proj  [D, D]
    bv = in_b[2 * D:3 * D]
    w_total = proj_w.T @ wv.T @ out_w.T                        # [C, D]
    b_total = ((proj_b @ wv.T + bv) @ out_w.T + out_b)[None, :]  # [1, D]
    return jnp.asarray(w_total, jnp.float32), jnp.asarray(b_total, jnp.float32)


@functools.partial(jax.jit, static_argnames=("num_latents",))
def perceiver_resampler(cond, w_total, b_total, *, num_latents):
    """Per-call path: one pallas_call, one matmul, free reshape of the output."""
    B, _ = cond.shape
    D = w_total.shape[1]
    vmem = pl.BlockSpec(memory_space=pltpu.MemorySpace.VMEM)
    flat = pl.pallas_call(
        functools.partial(_resampler_kernel, num_latents=num_latents),
        out_shape=jax.ShapeDtypeStruct((B, num_latents * D), jnp.float32),
        in_specs=[vmem, vmem, vmem],
        out_specs=vmem,
    )(cond, w_total, b_total)
    return flat.reshape(B, num_latents, D)   # row-major view, no data movement


def reference(cond, latents, raw_params, n_heads):
    """Pure-JAX reference with the exact PyTorch MultiheadAttention math."""
    proj_w, proj_b, in_w, in_b, out_w, out_b = raw_params
    B = cond.shape[0]
    L, D = latents.shape
    HD = D // n_heads
    kv = cond @ proj_w.T + proj_b                                    # [B, D]
    q = latents @ in_w[:D].T + in_b[:D]                              # [L, D]
    k = kv @ in_w[D:2 * D].T + in_b[D:2 * D]                         # [B, D]
    v = kv @ in_w[2 * D:].T + in_b[2 * D:]                           # [B, D]
    qh = q.reshape(L, n_heads, HD)
    kh = k.reshape(B, n_heads, HD)
    vh = v.reshape(B, n_heads, HD)
    s = jnp.einsum('lhe,bhe->bhl', qh, kh) / math.sqrt(HD)           # [B, H, L]
    w = jax.nn.softmax(s[..., None], axis=-1)[..., 0]                # key len 1 -> 1.0
    ctx = (w[..., None] * vh[:, :, None, :])                         # [B, H, L, HD]
    ctx = jnp.transpose(ctx, (0, 2, 1, 3)).reshape(B, L, D)
    return ctx @ out_w.T + out_b


if __name__ == "__main__":
    # Small shapes consistent with the module (cond_dim, d_model, num_latents, n_heads).
    B, COND_DIM, D_MODEL, NUM_LATENTS, N_HEADS = 2, 32, 64, 16, 4

    key = jax.random.PRNGKey(0)
    keys = jax.random.split(key, 8)

    # Deterministic synthetic parameters (shapes from PerceiverResampler.__init__).
    latents = jax.random.normal(keys[0], (NUM_LATENTS, D_MODEL), jnp.float32)      # latents (leading 1 dropped)
    proj_w = 0.05 * jax.random.normal(keys[1], (D_MODEL, COND_DIM), jnp.float32)   # nn.Linear weight
    proj_b = 0.05 * jax.random.normal(keys[2], (D_MODEL,), jnp.float32)
    in_w = 0.05 * jax.random.normal(keys[3], (3 * D_MODEL, D_MODEL), jnp.float32)  # MHA in_proj_weight
    in_b = 0.05 * jax.random.normal(keys[4], (3 * D_MODEL,), jnp.float32)
    out_w = 0.05 * jax.random.normal(keys[5], (D_MODEL, D_MODEL), jnp.float32)     # MHA out_proj
    out_b = 0.05 * jax.random.normal(keys[6], (D_MODEL,), jnp.float32)

    cond = jax.random.normal(keys[7], (B, COND_DIM), jnp.float32)

    raw_params = (proj_w, proj_b, in_w, in_b, out_w, out_b)

    # One-time fold (init-time), then the cheap per-call path.
    w_total, b_total = fold_params(raw_params, N_HEADS)
    w_total = jax.block_until_ready(w_total)

    out = perceiver_resampler(cond, w_total, b_total, num_latents=NUM_LATENTS)
    out = jax.block_until_ready(out)

    ref = reference(cond, latents, raw_params, N_HEADS)
    assert out.shape == (B, NUM_LATENTS, D_MODEL)
    assert jnp.allclose(out, ref, rtol=1e-4, atol=1e-5), "kernel mismatch vs reference"

    print("KERNEL_OK")
</pallas_src>

<mosaic_0001>
module attributes {stable_mosaic.version = 11 : i64} {
  func.func @_resampler_kernel(%arg0: memref<2x32xf32, #tpu.memory_space<vmem>>, %arg1: memref<32x64xf32, #tpu.memory_space<vmem>>, %arg2: memref<1x64xf32, #tpu.memory_space<vmem>>, %arg3: memref<2x1024xf32, #tpu.memory_space<vmem>>) attributes {dimension_semantics = [], scalar_prefetch = 0 : i64, scratch_operands = 0 : i64, tpu.core_type = #tpu.core_type<tc>} {
    %c0 = arith.constant 0 : index
    %c0_0 = arith.constant 0 : index
    %0 = vector.load %arg0[%c0, %c0_0] : memref<2x32xf32, #tpu.memory_space<vmem>>, vector<2x32xf32>
    %c0_1 = arith.constant 0 : index
    %c0_2 = arith.constant 0 : index
    %1 = vector.load %arg1[%c0_1, %c0_2] : memref<32x64xf32, #tpu.memory_space<vmem>>, vector<32x64xf32>
    %cst = arith.constant dense<0.000000e+00> : vector<2x64xf32>
    %2 = tpu.matmul %0, %1, %cst {dimension_numbers = #tpu.dot_dimension_numbers<[1], [0], [0], [1], [0, 0, 1, 1], [], []>} : vector<2x32xf32>, vector<32x64xf32>, vector<2x64xf32> -> vector<2x64xf32>
    %c0_3 = arith.constant 0 : index
    %c0_4 = arith.constant 0 : index
    %3 = vector.load %arg2[%c0_3, %c0_4] : memref<1x64xf32, #tpu.memory_space<vmem>>, vector<1x64xf32>
    %4 = vector.broadcast %3 : vector<1x64xf32> to vector<2x64xf32>
    %5 = arith.addf %2, %4 : vector<2x64xf32>
    %6 = tpu.concatenate %5, %5, %5, %5, %5, %5, %5, %5, %5, %5, %5, %5, %5, %5, %5, %5 in 1 : vector<2x64xf32>, vector<2x64xf32>, vector<2x64xf32>, vector<2x64xf32>, vector<2x64xf32>, vector<2x64xf32>, vector<2x64xf32>, vector<2x64xf32>, vector<2x64xf32>, vector<2x64xf32>, vector<2x64xf32>, vector<2x64xf32>, vector<2x64xf32>, vector<2x64xf32>, vector<2x64xf32>, vector<2x64xf32> -> vector<2x1024xf32>
    %c0_5 = arith.constant 0 : index
    %c0_6 = arith.constant 0 : index
    %7 = vector.load %arg3[%c0_5, %c0_6] : memref<2x1024xf32, #tpu.memory_space<vmem>>, vector<2x1024xf32>
    tpu.vector_store %arg3[%c0_5, %c0_6], %6 {strides = array<i32>} : memref<2x1024xf32, #tpu.memory_space<vmem>>, vector<2x1024xf32>,
    return
  }
}

</mosaic_0001>

<bundles_post_ra>
// kernel: perceiver_resampler.1
= control target key start
LH: loop header
LB: loop body
LE: loop exit
PB: predicated region body
PF: predicated region fallthrough
CT: control target
= control target key end

     0   :  { %8 = vsyncpa [#allocation3], 0  ;;  %s201_s0 = inlined_call_operand.hbm [shape: f32[2,32], index: 0, kind: input, shape index: {}]   ;;  %s202_s1 = inlined_call_operand.hbm [shape: f32[32,64], index: 1, kind: input, shape index: {}]   ;;  %s203_s2 = inlined_call_operand.vmem [shape: f32[1,64], index: 2, kind: input, shape index: {}]   ;;  %s204_s3 = inlined_call_operand.vmem [shape: f32[2,1024], index: 3, kind: output, shape index: {}]  }
   0x1   :  { %s15_s14 = sshll.u32 %s201_s0, 4  ;;  %s16_s14 = int_to_ptr.hbm [resolvable:$true] %s15_s14 }
   0x2   :  { %9 = vsyncpa [#allocation5], 0  ;;  %s161_s15 = smov [#allocation2]   ;;  %s25_s19 = sshll.u32 %s202_s1, 4  ;;  %s26_s19 = int_to_ptr.hbm [resolvable:$true] %s25_s19 }
   0x3   :  { %s17_s16 = sshll.u32 %s161_s15, 4  ;;  %s162_s20 = smov [#allocation4]   ;;  %s18_s16 = int_to_ptr.vmem [resolvable:$true] %s17_s16 }
   0x4   :  { %20 = dma.hbm_to_vmem [thread:$0]  %s16_s14, 32, %s18_s16, [#allocation3]  }
   0x5   :  { %s27_s21 = sshll.u32 %s162_s20, 4  ;;  %s163_s22 = smov 128   ;;  %s28_s21 = int_to_ptr.vmem [resolvable:$true] %s27_s21 }
   0x6   :  { %s164_s23 = smov 8  }
   0x7   :  { %33 = dma.hbm_to_vmem [thread:$0]  %s26_s19, 512, %s28_s21, [#allocation5], %s163_s22, %s163_s22, %s164_s23  }
   0x8   :  { %157 = dma.done.wait [#allocation3], 32  }
   0x9   :  { %158 = vsyncadd [#allocation3], 4294967264 }
   0xa   :  { %159 = dma.done.wait [#allocation5], 512  }
   0xb   :  { %160 = vsyncadd [#allocation5], 4294966784  ;;  %v48_v0 = vld [vmem:[#allocation4 + $0x18] sm:$0xff]  ;;  %v47_v1 = vld [vmem:[#allocation4 + $0x10] sm:$0xff]  ;;  %vm53_vm0 = vcmask 261120   ;;  %s165_s24 = smov 64  }
   0xc   :  { %69 = vmatpush.msra.mxu0 %v48_v0  ;;  %v46_v2 = vld [vmem:[#allocation4 + $0x8] sm:$0xff]  ;;  %v45_v3 = vld [vmem:[#allocation4] sm:$0xff]  ;;  %v44_v4 = vld [vmem:[#allocation2] sm:$0x3]  ;;  %vm81_vm1 = vcmask 523264   ;;  %vm87_vm2 = vcmask 1041408  }
   0xd   :  { %v108_v5 = vld [vmem:[%s203_s2] ss:$0 sm:$0xff]  ;;  %vm89_vm3 = vcmask 1045508   ;;  %vm91_vm4 = vcmask 1043456  }
   0xe   :  { %70 = vmatpush.msra.mxu0 %v47_v1 }
  0x10   :  { %71 = vmatpush.msra.mxu0 %v46_v2 }
  0x12   :  { %72 = vmatpush.msra.mxu0 %v45_v3 }
  0x13   :  { %102 = vmatmul.msk.f32.vlgmr.msra.gmra.mxu0 %vm53_vm0, %v44_v4 }
  0x90   :  { %v74_v6 = vpop.f32.mrf.mxu0 }
  0x91   :  { %v75_v7 = vadd.f32 %v108_v5, %v74_v6 }
  0x93   :  { %78 = vrot.lane.b32.xlu0 %v75_v7, %s165_s24 }
 0x105   :  { %v79_v8 = vpop.permute.xlu0 %78 }
 0x106   :  { %v82_v9 = vsel %vm81_vm1, %v75_v7, %v79_v8 }
 0x107   :  { %v84_v10 = vrot.slane %v82_v9, 6  ;;  %v85_v11 = vrot.slane %v82_v9, 4  ;;  %v86_v12 = vrot.slane %v82_v9, 2 }
 0x109   :  { %v88_v13 = vsel %vm87_vm2, %v82_v9, %v84_v10  ;;  %v90_v14 = vsel %vm89_vm3, %v85_v11, %v86_v12 }
 0x10a   :  { %v92_v15 = vsel %vm91_vm4, %v88_v13, %v90_v14 }
 0x10b   :  { %94 = vst [vmem:[%s204_s3] sm:$0xff] %v92_v15 }
 0x10c   :  { %95 = vst [vmem:[%s204_s3 + $0x8] sm:$0xff] %v92_v15 }
 0x10d   :  { %100 = vsyncpa [#allocation3], 1 }
 0x10e   :  { %101 = vsyncpa [#allocation5], 1 }

</bundles_post_ra>
